<compile_context>
chip_gen: v7x
topology: tpu7x:2x2x1
jax: 0.10.0
libtpu: 0.0.40
codegen_flags: <defaults>
</compile_context>

<pallas_src>
import jax
import jax.numpy as jnp
from jax.experimental import pallas as pl
from jax.experimental.pallas import tpu as pltpu

STUDENT_TEMP = 0.1


def _dino_loss_kernel(s_ref, t_ref, out_ref, x_acc, t_acc, l_acc):
    # s_ref:   (tm, C)  student logits tile for student batch element b
    # t_ref:   (tm, C)  teacher target tile for teacher batch element b
    # out_ref: (1, 1)   per-split partial (un-normalized) loss
    # x_acc:   (tm, C)  f32 scratch: sum_b inp[b]/temp
    # t_acc:   (tm, C)  f32 scratch: sum_b tgt[b]
    # l_acc:   (tm, 1)  f32 scratch: sum_b logsumexp_b
    mi = pl.program_id(1)
    b = pl.program_id(2)
    nb = pl.num_programs(2)

    # Zero the (split-resident) output only at the very first step of this split.
    @pl.when(jnp.logical_and(mi == 0, b == 0))
    def _():
        out_ref[...] = jnp.zeros_like(out_ref)

    # Reset the per-M-tile accumulators at the start of each b sweep.
    @pl.when(b == 0)
    def _():
        x_acc[...] = jnp.zeros_like(x_acc)
        t_acc[...] = jnp.zeros_like(t_acc)
        l_acc[...] = jnp.zeros_like(l_acc)

    x = s_ref[...].astype(jnp.float32) * (1.0 / STUDENT_TEMP)            # (tm, C)
    m = jnp.max(x, axis=-1, keepdims=True)                               # (tm, 1)
    lse = m + jnp.log(jnp.sum(jnp.exp(x - m), axis=-1, keepdims=True))   # logsumexp(x)

    x_acc[...] += x
    l_acc[...] += lse
    t_acc[...] += t_ref[...].astype(jnp.float32)

    # Finalize once per M tile, after the last student/teacher batch element.
    @pl.when(b == nb - 1)
    def _():
        tsum = t_acc[...]                                                # (tm, C)
        trow = jnp.sum(tsum, axis=-1, keepdims=True)                     # (tm, 1)
        # Exact: sum_{bs,bt} sum_C tgt[bt]*(x_bs - lse_bs)
        #      = sum(tsum * X) - sum(trow * L)
        contrib = jnp.sum(tsum * x_acc[...]) - jnp.sum(trow * l_acc[...])
        out_ref[...] += -contrib


def _vmem_budget_bytes():
    # Explicit VMEM limit: ~3/4 of physical, capped at 96 MiB
    # (=> ~48 MiB on v7x's 64 MiB VMEM, 96 MiB on v5e/v6e's 128 MiB).
    phys = 64 << 20  # conservative fallback = v7x physical
    try:
        info = pltpu.get_tpu_info()
        phys = int(getattr(info, "vmem_capacity_bytes", phys))
    except Exception:
        pass
    return min((phys * 3) // 4, 96 << 20)


def _pick_tile(M, C, s_itemsize, t_itemsize, vmem_limit_bytes):
    """VMEM-aware row-tile: largest divisor of M that fits the byte budget."""
    # Per row of a tile: double-buffered student + teacher input blocks plus
    # two f32 accumulator rows (x_acc, t_acc); small slack for l_acc/out/temps.
    per_row = C * (2 * s_itemsize + 2 * t_itemsize + 2 * 4) + 64
    budget = int(vmem_limit_bytes * 0.7)          # headroom for compiler scratch
    max_rows = max(8, budget // per_row)
    max_rows = min(max_rows, 2048, M)             # >2048 rows buys nothing (mem-bound)
    for tm in range(int(max_rows), 0, -1):
        if M % tm == 0 and (tm % 8 == 0 or tm == M):
            return tm
    return M                                      # fallback: fully resident M


def dino_loss(inp, tgt):
    """inp, tgt: (B, N, T, C). Returns scalar float32 total_loss."""
    B, N, T, C = inp.shape
    M = N * T
    s = inp.reshape(B, M, C)
    t = tgt.reshape(B, M, C)

    vmem_limit = _vmem_budget_bytes()
    tm = _pick_tile(M, C, s.dtype.itemsize, t.dtype.itemsize, vmem_limit)

    nm_total = M // tm
    # Leading "parallel" split of the M tiles: megacore sharding on v7x, a
    # harmless size-1 axis otherwise.
    nsplit = 2 if nm_total % 2 == 0 else 1
    nm = nm_total // nsplit

    def in_map(c, mi, b):
        return (b, c * nm + mi, 0)

    partial = pl.pallas_call(
        _dino_loss_kernel,
        out_shape=jax.ShapeDtypeStruct((nsplit, 1), jnp.float32),
        grid_spec=pltpu.PrefetchScalarGridSpec(
            num_scalar_prefetch=0,
            grid=(nsplit, nm, B),
            in_specs=[
                pl.BlockSpec((None, tm, C), in_map),   # student logits tile
                pl.BlockSpec((None, tm, C), in_map),   # teacher target tile
            ],
            out_specs=pl.BlockSpec((1, 1), lambda c, mi, b: (c, 0)),
            scratch_shapes=[
                pltpu.VMEM((tm, C), jnp.float32),      # sum_b inp[b]/temp
                pltpu.VMEM((tm, C), jnp.float32),      # sum_b tgt[b]
                pltpu.VMEM((tm, 1), jnp.float32),      # sum_b logsumexp_b
            ],
        ),
        compiler_params=pltpu.CompilerParams(
            dimension_semantics=("parallel", "arbitrary", "arbitrary"),
            vmem_limit_bytes=vmem_limit,
        ),
    )(s, t)

    # Each (bs, bt) pair is a mean over N*T rows -> single 1/M at the end.
    return jnp.sum(partial) * (1.0 / M)


def dino_loss_ref(inp, tgt, student_temp=STUDENT_TEMP):
    # Faithful transcription of DINOLoss.forward (double python loop over the
    # leading batch axis, including the bs == bt pair, as the module does).
    total = jnp.float32(0.0)
    for bs in range(inp.shape[0]):
        lsm = jax.nn.log_softmax(inp[bs].astype(jnp.float32) / student_temp, axis=-1)
        for bt in range(tgt.shape[0]):
            loss = jnp.sum(tgt[bt].astype(jnp.float32) * lsm, axis=-1)
            total = total - jnp.mean(loss)
    return total


if __name__ == "__main__":
    # Small shapes consistent with the module: out_dim (C) = 128.
    B, N, T, C = 2, 4, 8, 128
    key = jax.random.PRNGKey(0)
    k1, k2 = jax.random.split(key)

    inp = jax.random.normal(k1, (B, N, T, C), dtype=jnp.float32)            # student logits
    teacher_logits = jax.random.normal(k2, (B, N, T, C), dtype=jnp.float32)
    # teacher outputs are softmaxed/centered upstream; emulate with a softmax (glue)
    tgt = jax.nn.softmax(teacher_logits / 0.03, axis=-1)

    out = dino_loss(inp, tgt)
    out = jax.block_until_ready(out)

    ref = dino_loss_ref(inp, tgt)
    assert jnp.allclose(out, ref, rtol=1e-5, atol=1e-4), (out, ref)

    # NOTE: CustomDinoLoss.forward itself does not `return` the value of
    # super().forward(); we expose the computed loss value anyway since that is
    # the forward-pass computation.
    # TODO(synk): center EMA update / sinkhorn_knopp / torch.distributed collectives
    # are training-state utilities outside forward() and are not implemented here.
    print("KERNEL_OK")
</pallas_src>

<mosaic_0001>
module attributes {stable_mosaic.version = 11 : i64} {
  func.func @_dino_loss_kernel(%arg0: i32, %arg1: i32, %arg2: i32, %arg3: memref<1x32x128xf32, #tpu.memory_space<vmem>>, %arg4: memref<1x32x128xf32, #tpu.memory_space<vmem>>, %arg5: memref<1x1xf32, #tpu.memory_space<vmem>>, %arg6: memref<32x128xf32, #tpu.memory_space<vmem>>, %arg7: memref<32x128xf32, #tpu.memory_space<vmem>>, %arg8: memref<32x1xf32, #tpu.memory_space<vmem>>) attributes {dimension_semantics = [#tpu.dimension_semantics<parallel>, #tpu.dimension_semantics<arbitrary>, #tpu.dimension_semantics<arbitrary>], iteration_bounds = array<i64: 1, 1, 2>, scalar_prefetch = 0 : i64, scratch_operands = 3 : i64, tpu.core_type = #tpu.core_type<tc>, window_params = [{transform_indices = @transform_0, window_bounds = array<i64: 1, 32, 128>}, {transform_indices = @transform_1, window_bounds = array<i64: 1, 32, 128>}, {transform_indices = @transform_2, window_bounds = array<i64: 1, 1>}]} {
    %c0_i32 = arith.constant 0 : i32
    %0 = arith.cmpi eq, %arg1, %c0_i32 : i32
    %c0_i32_0 = arith.constant 0 : i32
    %1 = arith.cmpi eq, %arg2, %c0_i32_0 : i32
    %2 = arith.andi %0, %1 : i1
    %3 = arith.extui %2 : i1 to i32
    %c0_i32_1 = arith.constant 0 : i32
    %4 = arith.cmpi ne, %3, %c0_i32_1 : i32
    scf.if %4 {
      %cst_24 = arith.constant 0.000000e+00 : f32
      %35 = vector.broadcast %cst_24 : f32 to vector<1x1xf32>
      %c0_25 = arith.constant 0 : index
      %c0_26 = arith.constant 0 : index
      %36 = vector.load %arg5[%c0_25, %c0_26] : memref<1x1xf32, #tpu.memory_space<vmem>>, vector<1x1xf32>
      tpu.vector_store %arg5[%c0_25, %c0_26], %35 {strides = array<i32>} : memref<1x1xf32, #tpu.memory_space<vmem>>, vector<1x1xf32>,
    } else {
    }
    %c0_i32_2 = arith.constant 0 : i32
    %5 = arith.cmpi eq, %arg2, %c0_i32_2 : i32
    %6 = arith.extui %5 : i1 to i32
    %c0_i32_3 = arith.constant 0 : i32
    %7 = arith.cmpi ne, %6, %c0_i32_3 : i32
    scf.if %7 {
      %cst_24 = arith.constant 0.000000e+00 : f32
      %35 = vector.broadcast %cst_24 : f32 to vector<32x128xf32>
      %c0_25 = arith.constant 0 : index
      %c0_26 = arith.constant 0 : index
      %36 = vector.load %arg6[%c0_25, %c0_26] : memref<32x128xf32, #tpu.memory_space<vmem>>, vector<32x128xf32>
      tpu.vector_store %arg6[%c0_25, %c0_26], %35 {strides = array<i32>} : memref<32x128xf32, #tpu.memory_space<vmem>>, vector<32x128xf32>,
      %cst_27 = arith.constant 0.000000e+00 : f32
      %37 = vector.broadcast %cst_27 : f32 to vector<32x128xf32>
      %c0_28 = arith.constant 0 : index
      %c0_29 = arith.constant 0 : index
      %38 = vector.load %arg7[%c0_28, %c0_29] : memref<32x128xf32, #tpu.memory_space<vmem>>, vector<32x128xf32>
      tpu.vector_store %arg7[%c0_28, %c0_29], %37 {strides = array<i32>} : memref<32x128xf32, #tpu.memory_space<vmem>>, vector<32x128xf32>,
      %cst_30 = arith.constant 0.000000e+00 : f32
      %39 = vector.broadcast %cst_30 : f32 to vector<32x1xf32>
      %c0_31 = arith.constant 0 : index
      %c0_32 = arith.constant 0 : index
      %40 = vector.load %arg8[%c0_31, %c0_32] : memref<32x1xf32, #tpu.memory_space<vmem>>, vector<32x1xf32>
      tpu.vector_store %arg8[%c0_31, %c0_32], %39 {strides = array<i32>} : memref<32x1xf32, #tpu.memory_space<vmem>>, vector<32x1xf32>,
    } else {
    }
    %c0 = arith.constant 0 : index
    %c0_4 = arith.constant 0 : index
    %c0_5 = arith.constant 0 : index
    %8 = vector.load %arg3[%c0, %c0_4, %c0_5] : memref<1x32x128xf32, #tpu.memory_space<vmem>>, vector<1x32x128xf32>
    %9 = vector.shape_cast %8 : vector<1x32x128xf32> to vector<32x128xf32>
    %cst = arith.constant 1.000000e+01 : f32
    %10 = vector.broadcast %cst : f32 to vector<32x128xf32>
    %11 = arith.mulf %9, %10 : vector<32x128xf32>
    %cst_6 = arith.constant dense<0xFF800000> : vector<32xf32>
    %12 = vector.multi_reduction <maximumf>, %11, %cst_6 [1] : vector<32x128xf32> to vector<32xf32>
    %13 = vector.shape_cast %12 : vector<32xf32> to vector<32x1xf32>
    %14 = vector.broadcast %13 : vector<32x1xf32> to vector<32x128xf32>
    %15 = arith.subf %11, %14 : vector<32x128xf32>
    %16 = math.exp %15 : vector<32x128xf32>
    %cst_7 = arith.constant dense<0.000000e+00> : vector<32xf32>
    %17 = vector.multi_reduction <add>, %16, %cst_7 [1] : vector<32x128xf32> to vector<32xf32>
    %18 = vector.shape_cast %17 : vector<32xf32> to vector<32x1xf32>
    %19 = math.log %18 : vector<32x1xf32>
    %20 = arith.addf %13, %19 : vector<32x1xf32>
    %c0_8 = arith.constant 0 : index
    %c0_9 = arith.constant 0 : index
    %21 = vector.load %arg6[%c0_8, %c0_9] : memref<32x128xf32, #tpu.memory_space<vmem>>, vector<32x128xf32>
    %22 = arith.addf %21, %11 : vector<32x128xf32>
    %c0_10 = arith.constant 0 : index
    %c0_11 = arith.constant 0 : index
    %23 = vector.load %arg6[%c0_10, %c0_11] : memref<32x128xf32, #tpu.memory_space<vmem>>, vector<32x128xf32>
    tpu.vector_store %arg6[%c0_10, %c0_11], %22 {strides = array<i32>} : memref<32x128xf32, #tpu.memory_space<vmem>>, vector<32x128xf32>,
    %c0_12 = arith.constant 0 : index
    %c0_13 = arith.constant 0 : index
    %24 = vector.load %arg8[%c0_12, %c0_13] : memref<32x1xf32, #tpu.memory_space<vmem>>, vector<32x1xf32>
    %25 = arith.addf %24, %20 : vector<32x1xf32>
    %c0_14 = arith.constant 0 : index
    %c0_15 = arith.constant 0 : index
    %26 = vector.load %arg8[%c0_14, %c0_15] : memref<32x1xf32, #tpu.memory_space<vmem>>, vector<32x1xf32>
    tpu.vector_store %arg8[%c0_14, %c0_15], %25 {strides = array<i32>} : memref<32x1xf32, #tpu.memory_space<vmem>>, vector<32x1xf32>,
    %c0_16 = arith.constant 0 : index
    %c0_17 = arith.constant 0 : index
    %27 = vector.load %arg7[%c0_16, %c0_17] : memref<32x128xf32, #tpu.memory_space<vmem>>, vector<32x128xf32>
    %c0_18 = arith.constant 0 : index
    %c0_19 = arith.constant 0 : index
    %c0_20 = arith.constant 0 : index
    %28 = vector.load %arg4[%c0_18, %c0_19, %c0_20] : memref<1x32x128xf32, #tpu.memory_space<vmem>>, vector<1x32x128xf32>
    %29 = vector.shape_cast %28 : vector<1x32x128xf32> to vector<32x128xf32>
    %30 = arith.addf %27, %29 : vector<32x128xf32>
    %c0_21 = arith.constant 0 : index
    %c0_22 = arith.constant 0 : index
    %31 = vector.load %arg7[%c0_21, %c0_22] : memref<32x128xf32, #tpu.memory_space<vmem>>, vector<32x128xf32>
    tpu.vector_store %arg7[%c0_21, %c0_22], %30 {strides = array<i32>} : memref<32x128xf32, #tpu.memory_space<vmem>>, vector<32x128xf32>,
    %c1_i32 = arith.constant 1 : i32
    %32 = arith.cmpi eq, %arg2, %c1_i32 : i32
    %33 = arith.extui %32 : i1 to i32
    %c0_i32_23 = arith.constant 0 : i32
    %34 = arith.cmpi ne, %33, %c0_i32_23 : i32
    scf.if %34 {
      %c0_24 = arith.constant 0 : index
      %c0_25 = arith.constant 0 : index
      %35 = vector.load %arg7[%c0_24, %c0_25] : memref<32x128xf32, #tpu.memory_space<vmem>>, vector<32x128xf32>
      %cst_26 = arith.constant dense<0.000000e+00> : vector<32xf32>
      %36 = vector.multi_reduction <add>, %35, %cst_26 [1] : vector<32x128xf32> to vector<32xf32>
      %37 = vector.shape_cast %36 : vector<32xf32> to vector<32x1xf32>
      %c0_27 = arith.constant 0 : index
      %c0_28 = arith.constant 0 : index
      %38 = vector.load %arg6[%c0_27, %c0_28] : memref<32x128xf32, #tpu.memory_space<vmem>>, vector<32x128xf32>
      %39 = arith.mulf %35, %38 : vector<32x128xf32>
      %40 = vector.shape_cast %39 : vector<32x128xf32> to vector<1x32x128xf32>
      %cst_29 = arith.constant dense<0.000000e+00> : vector<1xf32>
      %41 = vector.multi_reduction <add>, %40, %cst_29 [1, 2] : vector<1x32x128xf32> to vector<1xf32>
      %42 = vector.shape_cast %41 : vector<1xf32> to vector<1x1x1xf32>
      %43 = vector.extract %42[0, 0, 0] : f32 from vector<1x1x1xf32>
      %c0_30 = arith.constant 0 : index
      %c0_31 = arith.constant 0 : index
      %44 = vector.load %arg8[%c0_30, %c0_31] : memref<32x1xf32, #tpu.memory_space<vmem>>, vector<32x1xf32>
      %45 = arith.mulf %37, %44 : vector<32x1xf32>
      %46 = vector.shape_cast %45 : vector<32x1xf32> to vector<1x32x1xf32>
      %cst_32 = arith.constant dense<0.000000e+00> : vector<1xf32>
      %47 = vector.multi_reduction <add>, %46, %cst_32 [1, 2] : vector<1x32x1xf32> to vector<1xf32>
      %48 = vector.shape_cast %47 : vector<1xf32> to vector<1x1x1xf32>
      %49 = vector.extract %48[0, 0, 0] : f32 from vector<1x1x1xf32>
      %50 = arith.subf %43, %49 : f32
      %c0_33 = arith.constant 0 : index
      %c0_34 = arith.constant 0 : index
      %51 = vector.load %arg5[%c0_33, %c0_34] : memref<1x1xf32, #tpu.memory_space<vmem>>, vector<1x1xf32>
      %cst_35 = arith.constant 0.000000e+00 : f32
      %52 = arith.subf %cst_35, %50 : f32
      %53 = vector.broadcast %52 : f32 to vector<1x1xf32>
      %54 = arith.addf %51, %53 : vector<1x1xf32>
      %c0_36 = arith.constant 0 : index
      %c0_37 = arith.constant 0 : index
      %55 = vector.load %arg5[%c0_36, %c0_37] : memref<1x1xf32, #tpu.memory_space<vmem>>, vector<1x1xf32>
      tpu.vector_store %arg5[%c0_36, %c0_37], %54 {strides = array<i32>} : memref<1x1xf32, #tpu.memory_space<vmem>>, vector<1x1xf32>,
    } else {
    }
    return
  }
  func.func @transform_0(%arg0: i32, %arg1: i32, %arg2: i32) -> (i32, i32, i32) {
    %c1_i32 = arith.constant 1 : i32
    %0 = arith.muli %arg0, %c1_i32 : i32
    %1 = arith.addi %0, %arg1 : i32
    %c0_i32 = arith.constant 0 : i32
    %c0_i32_0 = arith.constant 0 : i32
    return %arg2, %1, %c0_i32 : i32, i32, i32
  }
  func.func @transform_1(%arg0: i32, %arg1: i32, %arg2: i32) -> (i32, i32, i32) {
    %c1_i32 = arith.constant 1 : i32
    %0 = arith.muli %arg0, %c1_i32 : i32
    %1 = arith.addi %0, %arg1 : i32
    %c0_i32 = arith.constant 0 : i32
    %c0_i32_0 = arith.constant 0 : i32
    return %arg2, %1, %c0_i32 : i32, i32, i32
  }
  func.func @transform_2(%arg0: i32, %arg1: i32, %arg2: i32) -> (i32, i32) {
    %c0_i32 = arith.constant 0 : i32
    %c0_i32_0 = arith.constant 0 : i32
    return %arg0, %c0_i32 : i32, i32
  }
}

</mosaic_0001>

<bundles_post_ra>
// kernel: tpu_custom_call.1
= control target key start
LH: loop header
LB: loop body
LE: loop exit
PB: predicated region body
PF: predicated region fallthrough
CT: control target
= control target key end

     0   :  { %7 = vsyncpa [#allocation6], 0  ;;  %s1029_s0 = inlined_call_operand.hbm [shape: f32[2,32,128], index: 0, kind: input, shape index: {}]   ;;  %s1030_s1 = inlined_call_operand.hbm [shape: f32[2,32,128], index: 1, kind: input, shape index: {}]   ;;  %s1031_s2 = inlined_call_operand.hbm [shape: f32[1,1], index: 2, kind: output, shape index: {}]  }
   0x1   :  { %9 = vsyncpa [#allocation6 + $0x1], 0 }
   0x2   :  { %10 = vsyncpa [#allocation9], 0 }
   0x3   :  { %12 = vsyncpa [#allocation9 + $0x1], 0 }
   0x4   :  { %13 = vsyncpa [#allocation7], 0  ;;  %s797_s9 = smov 0   ;;  %s799_s10 = smov 0  }
   0x5   :  { %s801_s11 = smov 0   ;;  %s803_s12 = smov 0  }
   0x6   :  { %s805_s13 = smov 0   ;;  %s807_s14 = smov 0  }
   0x7 LB: > { %s516_s15 = sadd.s32 4294967295, %s773_s14   ;;  %s31_s16 = sadd.s32 1, %s769_s13  ;;  %s773_s14 = sphi %s807_s14, %s19_s14   ;;  %s769_s13 = sphi %s805_s13, %s1043_s13   ;;  %s765_s12 = sphi %s803_s12, %s1042_s12   ;;  %s761_s11 = sphi %s801_s11, %s1041_s11   ;;  %s757_s10 = sphi %s799_s10, %s1040_s10   ;;  %s753_s9 = sphi %s797_s9, %s1039_s9  }
   0x8   : > { %p32_p0 = scmp.ge.s32.totalorder %s31_s16, 2  ;;  %s49_s17 = sadd.s32 1, %s761_s11 }
   0x9   : > { %p56_p1 = scmp.ne.s32.totalorder %s761_s11, %s757_s10  ;;  %p57_p2 = scmp.eq.s32.totalorder %s773_s14, 0 }
   0xa   : > { %s1045_s16 = smov (%p32_p0, %s31_s16), 0  ;;  %p62_p4 = scmp.ne.s32.totalorder %s757_s10, %s753_s9 }
   0xb   : > { %p833_p3 = por %p57_p2, %p56_p1  ;;  %s44_s19 = ssub.s32 %s769_s13, %s1045_s16 }
   0xc   : > { %p63_p5 = scmp.eq.s32.totalorder %s516_s15, 0  ;;  %p47_p6 = scmp.eq.s32.totalorder %s44_s19, 0 }
   0xd   : > { %p557_p8 = scmp.lt.s32.totalorder %s773_s14, 2  ;;  %s851_s22 = sand.u32 1, %s761_s11  }
   0xe   : > { %p842_p7 = por %p63_p5, %p62_p4  ;;  %s535_s23 = sshll.u32 %s769_s13, 9 }
   0xf   : > { %s848_s21 = scalar_select %p47_p6, %s761_s11, %s49_s17  }
  0x10   : > { %s1034_s20 = scalar_select %p842_p7, 1, 0 }
  0x11   : > { %s519_s24 = sshll.u32 %s851_s22, 5  ;;  %s860_s27 = scalar_lea.hbm %s1029_s0, %s535_s23 }
  0x12   : > { %s146_s28 = scalar_lea.vmem [#allocation5], %s519_s24  ;;  %p866_p9 = pnand %p557_p8, %p833_p3 }
  0x13   : > { %s156_s29 = sshll.u32 %s146_s28, 4  ;;  %s143_s3 = scalar_lea.sflag [#allocation6], %s851_s22  ;;  %s870_s29 = int_to_ptr.vmem [resolvable:$true] %s156_s29 }
  0x14   : > { %s629_s4 = scalar_lea.hbm %s860_s27, 512  ;;  %p631_p11 = pneg %p866_p9 }
  0x15   : > { %p630_p10 = scmp.ne.s32.totalorder %s860_s27, %s629_s4  ;;  %s634_s7 = scalar_lea.hbm %s1029_s0, 1024 }
  0x16   : > { %p635_p0 = scmp.lt.u32.totalorder %s860_s27, %s1029_s0  ;;  %p636_p1 = scmp.lt.u32.totalorder %s634_s7, %s629_s4 }
  0x17   : > { %p632_p12 = pnand %p631_p11, %p630_p10  ;;  %p638_p3 = scmp.lt.u32.totalorder %s629_s4, %s860_s27 }
  0x18   : > { %p637_p2 = por %p636_p1, %p635_p0 }
  0x19   : > { %p633_p13 = pneg %p632_p12 }
  0x1a   : > { %p639_p4 = por %p638_p3, %p637_p2 }
  0x1c   : > { %p640_p5 = pnand %p639_p4, %p633_p13 }
  0x1e   : > { %643 = shalt.err (!%p640_p5)
}
  0x1f   : > { %s644_s17 = scalar_lea.vmem %s870_s29, 512  ;;  %s775_s18 = smov [#allocation5]  }
  0x20   : > { %p645_p6 = scmp.ne.s32.totalorder %s870_s29, %s644_s17  ;;  %s649_s19 = sshll.u32 %s775_s18, 4  ;;  %s650_s19 = int_to_ptr.vmem [resolvable:$false] %s649_s19 }
  0x21   : > { %s651_s25 = scalar_lea.vmem %s650_s19, 1024  ;;  %p652_p12 = scmp.lt.s32.totalorder %s870_s29, %s650_s19 }
  0x22   : > { %p647_p8 = pnand %p645_p6, %p631_p11  ;;  %p653_p0 = scmp.lt.s32.totalorder %s651_s25, %s644_s17 }
  0x24   : > { %p648_p10 = pneg %p647_p8  ;;  %p654_p1 = por %p653_p0, %p652_p12 }
  0x26   : > { %p655_p2 = pnand %p654_p1, %p648_p10 }
  0x28   : > { %658 = shalt.err (!%p655_p2)
}
  0x29   : > { %s776_s26 = smov 128   ;;  %s777_s28 = smov 8  }
  0x2a   : > { %553 = dma.hbm_to_vmem [thread:$0]  (!%p866_p9), %s860_s27, 512, %s870_s29, %s143_s3, %s776_s26, %s776_s26, %s777_s28  }
  0x2b   : > { %p525_p13 = scmp.ge.s32.totalorder %s773_s14, 1  ;;  %p188_p3 = scmp.lt.s32.totalorder %s773_s14, 3 }
  0x2c   : > { %s914_s7 = scalar_lea.hbm %s1030_s1, %s535_s23  ;;  %s170_s8 = scalar_lea.vmem [#allocation8], %s519_s24 }
  0x2d   : > { %p905_p4 = pnand %p525_p13, %p188_p3  ;;  %s180_s9 = sshll.u32 %s170_s8, 4  ;;  %s918_s9 = int_to_ptr.vmem [resolvable:$true] %s180_s9 }
  0x2e   : > { %s167_s27 = scalar_lea.sflag [#allocation9], %s851_s22  ;;  %s659_s29 = scalar_lea.hbm %s914_s7, 512 }
  0x2f   : > { %p660_p5 = scmp.ne.s32.totalorder %s914_s7, %s659_s29  ;;  %s664_s23 = scalar_lea.hbm %s1030_s1, 1024 }
  0x30   : > { %p665_p10 = scmp.lt.u32.totalorder %s914_s7, %s1030_s1  ;;  %p666_p12 = scmp.lt.u32.totalorder %s664_s23, %s659_s29 }
  0x31   : > { %p662_p6 = pnand %p660_p5, %p631_p11  ;;  %p668_p1 = scmp.lt.u32.totalorder %s659_s29, %s914_s7 }
  0x32   : > { %p667_p0 = por %p666_p12, %p665_p10 }
  0x33   : > { %p663_p8 = pneg %p662_p6 }
  0x34   : > { %p669_p2 = por %p668_p1, %p667_p0 }
  0x36   : > { %p670_p13 = pnand %p669_p2, %p663_p8 }
  0x38   : > { %673 = shalt.err (!%p670_p13)
}
  0x39   : > { %s674_s24 = scalar_lea.vmem %s918_s9, 512  ;;  %s778_s25 = smov [#allocation8]  }
  0x3a   : > { %p675_p3 = scmp.ne.s32.totalorder %s918_s9, %s674_s24  ;;  %s679_s5 = sshll.u32 %s778_s25, 4  ;;  %s680_s5 = int_to_ptr.vmem [resolvable:$false] %s679_s5 }
  0x3b   : > { %s681_s6 = scalar_lea.vmem %s680_s5, 1024  ;;  %p682_p7 = scmp.lt.s32.totalorder %s918_s9, %s680_s5 }
  0x3c   : > { %p677_p5 = pnand %p675_p3, %p631_p11  ;;  %p683_p10 = scmp.lt.s32.totalorder %s681_s6, %s674_s24 }
  0x3e   : > { %p678_p6 = pneg %p677_p5  ;;  %p684_p12 = por %p683_p10, %p682_p7 }
  0x40   : > { %p685_p0 = pnand %p684_p12, %p678_p6 }
  0x42   : > { %688 = shalt.err (!%p685_p0)
}
  0x43   : > { %556 = dma.hbm_to_vmem [thread:$0]  (!%p866_p9), %s914_s7, 512, %s918_s9, %s167_s27, %s776_s26, %s776_s26, %s777_s28  }
  0x44   : > { %192 = sbr.rel (%p905_p4) target bundleno = 673 (0x2a1), region = 28  ;;  %s194_s8 = sand.u32 (!%p905_p4), 1, %s757_s10  }
  0x45   : > { %s526_s29 = sshll.u32 (!%p905_p4), %s194_s8, 5  ;;  %s195_s3 = scalar_lea.sflag (!%p905_p4), [#allocation6], %s194_s8 }
  0x46   : > { %s952_s17 = scalar_lea.vmem (!%p905_p4), [#allocation5], %s526_s29  ;;  %p1037_p7 = scmp.ne.s32.totalorder (!%p905_p4), %s1034_s20, 0 }
  0x4b   : > { %740 = dma.done.wait (%p1037_p7), %s195_s3, 512  }
  0x4c   : > { %742 = vsyncadd (%p1037_p7), %s195_s3, 4294966784  ;;  %s204_s22 = scalar_lea.sflag [#allocation9], %s194_s8  ;;  %s958_s30 = scalar_lea.vmem [#allocation8], %s526_s29 }
  0x4d   : > { %744 = dma.done.wait (%p1037_p7), %s204_s22, 512  }
  0x4e   : > { %746 = vsyncadd (%p1037_p7), %s204_s22, 4294966784  ;;  %p233_p9 = scmp.eq.s32.totalorder %s765_s12, 0 }
  0x4f   : > { %vm238_vm0 = vcmask (%p233_p9), 0   ;;  %v779_v0 = vmov (%p233_p9), 0.0  }
  0x50   : > { %237 = sbr.rel (!%p233_p9) target bundleno = 87 (0x57), region = 40  ;;  %239 = vst.msk [vmem:[#allocation10] sm:$0x1] (%p233_p9), %vm238_vm0, %v779_v0 }
  0x57 PF: > { %p529_p11 = scmp.ne.s32.totalorder %s765_s12, 0 }
  0x58   : > { %vm251_vm1 = vcmask (!%p529_p11), 7168   ;;  %v780_v1 = vmov (!%p529_p11), 0.0  }
  0x59   : > { %242 = sbr.rel (%p529_p11) target bundleno = 96 (0x60), region = 44  ;;  %243 = vst [vmem:[#allocation2] sm:$0xff] (!%p529_p11), %v780_v1  ;;  %244 = vst [vmem:[#allocation2 + $0x8] sm:$0xff] (!%p529_p11), %v780_v1 }
  0x5a   : > { %245 = vst [vmem:[#allocation2 + $0x10] sm:$0xff] (!%p529_p11), %v780_v1  ;;  %246 = vst [vmem:[#allocation2 + $0x18] sm:$0xff] (!%p529_p11), %v780_v1 }
  0x5b   : > { %247 = vst [vmem:[#allocation3] sm:$0xff] (!%p529_p11), %v780_v1  ;;  %248 = vst [vmem:[#allocation3 + $0x8] sm:$0xff] (!%p529_p11), %v780_v1 }
  0x5c   : > { %249 = vst [vmem:[#allocation3 + $0x10] sm:$0xff] (!%p529_p11), %v780_v1  ;;  %250 = vst [vmem:[#allocation3 + $0x18] sm:$0xff] (!%p529_p11), %v780_v1 }
  0x5d   : > { %252 = vst.msk [vmem:[#allocation4] sm:$0xff] (!%p529_p11), %vm251_vm1, %v780_v1  ;;  %253 = vst.msk [vmem:[#allocation4 + $0x8] sm:$0xff] (!%p529_p11), %vm251_vm1, %v780_v1 }
  0x5e   : > { %254 = vst.msk [vmem:[#allocation4 + $0x10] sm:$0xff] (!%p529_p11), %vm251_vm1, %v780_v1  ;;  %255 = vst.msk [vmem:[#allocation4 + $0x18] sm:$0xff] (!%p529_p11), %vm251_vm1, %v780_v1 }
  0x60 PF: > { %v256_v2 = vld [vmem:[%s952_s17] sm:$0xff]  ;;  %v258_v4 = vld [vmem:[%s952_s17 + $0x10] sm:$0xff]  ;;  %v257_v8 = vld [vmem:[%s952_s17 + $0x8] sm:$0xff]  ;;  %vm324_vm2 = vcmask 7168   ;;  %p530_p4 = scmp.ne.s32.totalorder %s765_s12, 1 }
  0x61   : > { %v304_v3 = vld [vmem:[#allocation2] sm:$0xff]  ;;  %v260_v5 = vmul.f32 10.0, %v256_v2  ;;  %v262_v6 = vmul.f32 10.0, %v258_v4  ;;  %v306_v7 = vld [vmem:[#allocation2 + $0x10] sm:$0xff]  ;;  %v305_v9 = vld [vmem:[#allocation2 + $0x8] sm:$0xff]  ;;  %v261_v10 = vmul.f32 10.0, %v257_v8 }
  0x62   : > { %v259_v11 = vld [vmem:[%s952_s17 + $0x18] sm:$0xff]  ;;  %v329_v34 = vld [vmem:[#allocation3] sm:$0xff]  ;;  %v330_v35 = vld [vmem:[#allocation3 + $0x8] sm:$0xff]  ;;  %vm410_vm3 = vcmask (!%p530_p4), 0  }
  0x63   : > { %v307_v12 = vld [vmem:[#allocation2 + $0x18] sm:$0xff]  ;;  %264 = vmax.xlane.f32.xlu0 %v260_v5  ;;  %v308_v13 = vadd.f32 %v304_v3, %v260_v5  ;;  %268 = vmax.xlane.f32.xlu1 %v262_v6  ;;  %v310_v14 = vadd.f32 %v306_v7, %v262_v6  ;;  %v263_v15 = vmul.f32 10.0, %v259_v11  ;;  %v309_v16 = vadd.f32 %v305_v9, %v261_v10  ;;  %v331_v36 = vld [vmem:[#allocation3 + $0x10] sm:$0xff]  ;;  %v333_v38 = vld [vmem:[%s958_s30] sm:$0xff] }
  0x64   : > { %v332_v37 = vld [vmem:[#allocation3 + $0x18] sm:$0xff]  ;;  %v334_v39 = vld [vmem:[%s958_s30 + $0x8] sm:$0xff]  ;;  %v335_v40 = vld [vmem:[%s958_s30 + $0x10] sm:$0xff]  ;;  %v337_v42 = vadd.f32 %v333_v38, %v329_v34 }
  0x65   : > { %312 = vst [vmem:[#allocation2] sm:$0xff] %v308_v13  ;;  %314 = vst [vmem:[#allocation2 + $0x10] sm:$0xff] %v310_v14  ;;  %v311_v17 = vadd.f32 %v307_v12, %v263_v15  ;;  %v336_v41 = vld [vmem:[%s958_s30 + $0x18] sm:$0xff]  ;;  %v338_v43 = vadd.f32 %v334_v39, %v330_v35  ;;  %v339_v44 = vadd.f32 %v335_v40, %v331_v36  ;;  %v316_v52 = vld [vmem:[#allocation4] sm:$0xff] }
  0x66   : > { %313 = vst [vmem:[#allocation2 + $0x8] sm:$0xff] %v309_v16  ;;  %v340_v45 = vadd.f32 %v336_v41, %v332_v37  ;;  %341 = vst [vmem:[#allocation3] sm:$0xff] %v337_v42  ;;  %v317_v58 = vld [vmem:[#allocation4 + $0x8] sm:$0xff]  ;;  %v318_v61 = vld [vmem:[#allocation4 + $0x10] sm:$0xff] }
  0x67   : > { %266 = vmax.xlane.f32.xlu0 %v261_v10  ;;  %315 = vst [vmem:[#allocation2 + $0x18] sm:$0xff] %v311_v17  ;;  %270 = vmax.xlane.f32.xlu1 %v263_v15  ;;  %342 = vst [vmem:[#allocation3 + $0x8] sm:$0xff] %v338_v43  ;;  %v319_v3 = vld [vmem:[#allocation4 + $0x18] sm:$0xff] }
  0x68   : > { %343 = vst [vmem:[#allocation3 + $0x10] sm:$0xff] %v339_v44  ;;  %344 = vst [vmem:[#allocation3 + $0x18] sm:$0xff] %v340_v45 }
  0x6c   : > { %v363_v14 = vld [vmem:[#allocation2 + $0x10] sm:$0xff] (!%p530_p4) }
  0x6d   : > { %v362_v11 = vld [vmem:[#allocation2 + $0x8] sm:$0xff] (!%p530_p4) }
  0x6e   : > { %v350_v8 = vld [vmem:[#allocation3 + $0x8] sm:$0xff] (!%p530_p4) }
  0x6f   : > { %v351_v7 = vld [vmem:[#allocation3 + $0x10] sm:$0xff] (!%p530_p4)  ;;  %v352_v9 = vld [vmem:[#allocation3 + $0x18] sm:$0xff] (!%p530_p4)  ;;  %v366_v13 = vmul.f32 (!%p530_p4), %v362_v11, %v350_v8 }
  0x70   : > { %v367_v16 = vmul.f32 (!%p530_p4), %v363_v14, %v351_v7 }
  0xf0   : > { %v265_v18 = vpop.xlane.xlu0 %264  ;;  %v269_v19 = vpop.xlane.xlu1 %268 }
  0xf1   : > { %v272_v20 = vsub.f32 %v260_v5, %v265_v18  ;;  %v274_v21 = vsub.f32 %v262_v6, %v269_v19  ;;  %v349_v6 = vld [vmem:[#allocation3] sm:$0xff] (!%p530_p4) }
  0xf3   : > { %v276_v22 = vmul.f32 1.442695, %v272_v20  ;;  %v280_v23 = vmul.f32 1.442695, %v274_v21 }
  0xf4   : > { %v267_v24 = vpop.xlane.xlu0 %266  ;;  %v271_v25 = vpop.xlane.xlu1 %270 }
  0xf5   : > { %613 = vpow2.f32 %v276_v22  ;;  %v273_v26 = vsub.f32 %v261_v10, %v267_v24  ;;  %v275_v27 = vsub.f32 %v263_v15, %v271_v25  ;;  %v361_v10 = vld [vmem:[#allocation2] sm:$0xff] (!%p530_p4)  ;;  %v364_v15 = vld [vmem:[#allocation2 + $0x18] sm:$0xff] (!%p530_p4) }
  0xf6   : > { %615 = vpow2.f32 %v280_v23  ;;  %v365_v12 = vmul.f32 (!%p530_p4), %v361_v10, %v349_v6 }
  0xf7   : > { %v278_v28 = vmul.f32 1.442695, %v273_v26  ;;  %v282_v29 = vmul.f32 1.442695, %v275_v27 }
  0xf8   : > { %v369_v17 = vadd.f32 (!%p530_p4), %v366_v13, %v365_v12 }
  0xf9   : > { %617 = vpow2.f32 %v278_v28 }
  0xfa   : > { %619 = vpow2.f32 %v282_v29 }
  0xff   : > { %v614_v30 = vpop.eup %613 }
 0x100   : > { %284 = vadd.xlane.f32.xlu0 %v614_v30  ;;  %v616_v31 = vpop.eup %615 }
 0x103   : > { %v618_v32 = vpop.eup %617 }
 0x104   : > { %288 = vadd.xlane.f32.xlu0 %v616_v31  ;;  %286 = vadd.xlane.f32.xlu1 %v618_v32  ;;  %v620_v33 = vpop.eup %619 }
 0x108   : > { %290 = vadd.xlane.f32.xlu1 %v620_v33  ;;  %353 = vadd.xlane.f32.xlu0 (!%p530_p4), %v349_v6 }
 0x10c   : > { %357 = vadd.xlane.f32.xlu1 (!%p530_p4), %v351_v7  ;;  %355 = vadd.xlane.f32.xlu0 (!%p530_p4), %v350_v8 }
 0x110   : > { %359 = vadd.xlane.f32.xlu1 (!%p530_p4), %v352_v9 }
 0x18d   : > { %v285_v46 = vpop.xlane.xlu0 %284 }
 0x18e   : > { %621 = vlog2.f32 %v285_v46 }
 0x191   : > { %v287_v47 = vpop.xlane.xlu1 %286  ;;  %v289_v48 = vpop.xlane.xlu0 %288 }
 0x192   : > { %623 = vlog2.f32 %v287_v47 }
 0x193   : > { %625 = vlog2.f32 %v289_v48 }
 0x195   : > { %v291_v49 = vpop.xlane.xlu1 %290  ;;  %v354_v22 = vpop.xlane.xlu0 (!%p530_p4), %353 }
 0x196   : > { %627 = vlog2.f32 %v291_v49 }
 0x198   : > { %v622_v50 = vpop.eup %621 }
 0x199   : > { %v293_v51 = vmul.f32 0.6931472, %v622_v50  ;;  %v358_v23 = vpop.xlane.xlu1 (!%p530_p4), %357  ;;  %v356_v28 = vpop.xlane.xlu0 (!%p530_p4), %355 }
 0x19b   : > { %v300_v53 = vadd.f32 %v293_v51, %v265_v18  ;;  %v368_v18 = vmul.f32 (!%p530_p4), %v364_v15, %v352_v9 }
 0x19c   : > { %v624_v54 = vpop.eup %623 }
 0x19d   : > { %v626_v55 = vpop.eup %625  ;;  %v320_v56 = vadd.f32 %v316_v52, %v300_v53  ;;  %v295_v57 = vmul.f32 0.6931472, %v624_v54  ;;  %v360_v29 = vpop.xlane.xlu1 (!%p530_p4), %359  ;;  %v406_v54 = vld [vmem:[#allocation10] sm:$0x1] (!%p530_p4) }
 0x19e   : > { %v297_v59 = vmul.f32 0.6931472, %v626_v55 }
 0x19f   : > { %325 = vst.msk [vmem:[#allocation4] sm:$0xff] %vm324_vm2, %v320_v56  ;;  %v301_v60 = vadd.f32 %v295_v57, %v267_v24 }
 0x1a0   : > { %v628_v62 = vpop.eup %627  ;;  %v302_v63 = vadd.f32 %v297_v59, %v269_v19  ;;  %v370_v19 = vadd.f32 (!%p530_p4), %v369_v17, %v367_v16 }
 0x1a1   : > { %v321_v0 = vadd.f32 %v317_v58, %v301_v60  ;;  %v299_v1 = vmul.f32 0.6931472, %v628_v62  ;;  %348 = sbr.rel (%p530_p4) target bundleno = 648 (0x288), region = 48 }
 0x1a2   : > { %v322_v2 = vadd.f32 %v318_v61, %v302_v63  ;;  %v371_v20 = vadd.f32 (!%p530_p4), %v370_v19, %v368_v18 }
 0x1a3   : > { %326 = vst.msk [vmem:[#allocation4 + $0x8] sm:$0xff] %vm324_vm2, %v321_v0  ;;  %v303_v4 = vadd.f32 %v299_v1, %v271_v25 }
 0x1a4   : > { %327 = vst.msk [vmem:[#allocation4 + $0x10] sm:$0xff] %vm324_vm2, %v322_v2  ;;  %372 = vadd.xlane.f32.xlu0 (!%p530_p4), %v371_v20 }
 0x1a5   : > { %v323_v5 = vadd.f32 %v319_v3, %v303_v4 }
 0x1a6   : > { %v381_v21 = vld [vmem:[#allocation4] sm:$0xff] (!%p530_p4) }
 0x1a7   : > { %328 = vst.msk [vmem:[#allocation4 + $0x18] sm:$0xff] %vm324_vm2, %v323_v5  ;;  %v385_v27 = vmul.f32 (!%p530_p4), %v381_v21, %v354_v22 }
 0x1a9   : > { %v389_v33 = vsel %vm324_vm2, %v385_v27, 0.0 }
 0x1aa   : > { %v382_v25 = vld [vmem:[#allocation4 + $0x8] sm:$0xff] }
 0x1ab   : > { %v383_v24 = vld [vmem:[#allocation4 + $0x10] sm:$0xff]  ;;  %v386_v31 = vmul.f32 %v382_v25, %v356_v28 }
 0x1ac   : > { %v387_v30 = vmul.f32 %v383_v24, %v358_v23 }
 0x1ad   : > { %v390_v34 = vsel %vm324_vm2, %v386_v31, 0.0 }
 0x1ae   : > { %v384_v26 = vld [vmem:[#allocation4 + $0x18] sm:$0xff]  ;;  %v391_v35 = vadd.f32 %v390_v34, %v389_v33  ;;  %v392_v36 = vsel %vm324_vm2, %v387_v30, 0.0 }
 0x1af   : > { %v388_v32 = vmul.f32 %v384_v26, %v360_v29 }
 0x1b0   : > { %v393_v38 = vadd.f32 %v392_v36, %v391_v35 }
 0x1b1   : > { %v394_v37 = vsel %vm324_vm2, %v388_v32, 0.0 }
 0x1b2   : > { %v395_v39 = vadd.f32 %v394_v37, %v393_v38 }
 0x1b4   : > { %396 = vadd.xlane.f32.xlu1 %v395_v39 }
 0x231   : > { %v373_v40 = vpop.xlane.xlu0 %372 }
 0x232   : > { %v374_v41 = vrot.slane %v373_v40, 4 }
 0x234   : > { %v375_v42 = vadd.f32 %v374_v41, %v373_v40 }
 0x236   : > { %v376_v43 = vrot.slane %v375_v42, 2 }
 0x238   : > { %v377_v44 = vadd.f32 %v376_v43, %v375_v42 }
 0x23a   : > { %v378_v45 = vrot.slane %v377_v44, 1 }
 0x23c   : > { %v379_v46 = vadd.f32 %v378_v45, %v377_v44 }
 0x23e   : > { %538 = vpush %v379_v46 }
 0x241   : > { %v397_v47 = vpop.xlane.xlu1 %396 }
 0x242   : > { %v398_v48 = vrot.slane %v397_v47, 4 }
 0x244   : > { %v399_v49 = vadd.f32 %v398_v48, %v397_v47 }
 0x246   : > { %v400_v50 = vrot.slane %v399_v49, 2 }
 0x248   : > { %v401_v51 = vadd.f32 %v400_v50, %v399_v49 }
 0x24a   : > { %v402_v52 = vrot.slane %v401_v51, 1 }
 0x24c   : > { %v403_v53 = vadd.f32 %v402_v52, %v401_v51 }
 0x24e   : > { %540 = vpush %v403_v53 }
 0x26f   : > { %s539_s12 = spop %538 }
 0x27f   : > { %s541_s20 = spop %540 }
 0x280   : > { %s405_s26 = ssub.f32 %s539_s12, %s541_s20 }
 0x282   : > { %s407_s28 = ssub.f32 0.0, %s405_s26 }
 0x284   : > { %v408_v55 = vstv %s407_s28 }
 0x285   : > { %v409_v56 = vadd.f32 %v408_v55, %v406_v54 }
 0x287   : > { %411 = vst.msk [vmem:[#allocation10] sm:$0x1] %vm410_vm3, %v409_v56 }
 0x288 PF: > { %p985_p8 = scmp.eq.s32.totalorder %s516_s15, 1  ;;  %s781_s7 = smov [#allocation10]  }
 0x289   : > { %s421_s9 = sshll.u32 %s781_s7, 4  ;;  %s422_s9 = int_to_ptr.vmem [resolvable:$true] %s421_s9 }
 0x28a   : > { %s689_s27 = scalar_lea.vmem %s422_s9, 16  ;;  %s695_s23 = scalar_lea.vmem %s422_s9, 32 }
 0x28b   : > { %p690_p1 = scmp.ne.s32.totalorder %s422_s9, %s689_s27  ;;  %p696_p3 = scmp.lt.s32.totalorder %s422_s9, %s422_s9 }
 0x28c   : > { %p697_p5 = scmp.lt.s32.totalorder %s695_s23, %s689_s27 }
 0x28d   : > { %p691_p2 = pnand %p690_p1, %p985_p8 }
 0x28e   : > { %p698_p6 = por %p697_p5, %p696_p3 }
 0x28f   : > { %p692_p13 = pneg %p691_p2 }
 0x291   : > { %p699_p10 = pnand %p698_p6, %p692_p13 }
 0x293   : > { %702 = shalt.err (!%p699_p10)
}
 0x294   : > { %s703_s19 = scalar_lea.hbm %s1031_s2, 16 }
 0x295   : > { %p704_p12 = scmp.ne.s32.totalorder %s1031_s2, %s703_s19  ;;  %p709_p9 = scmp.lt.u32.totalorder %s703_s19, %s1031_s2 }
 0x297   : > { %p705_p0 = pnand %p704_p12, %p985_p8 }
 0x299   : > { %p706_p7 = pneg %p705_p0 }
 0x29b   : > { %p711_p11 = pnand %p709_p9, %p706_p7 }
 0x29d   : > { %714 = shalt.err (!%p711_p11)
}
 0x29e   : > { %547 = dma.vmem_to_hbm [thread:$0]  (%p985_p8), %s422_s9, 16, %s1031_s2, [#allocation7]  }
 0x29f   : > { %748 = dma.done.wait (%p985_p8), [#allocation7], 16  }
 0x2a0   : > { %750 = vsyncadd (%p985_p8), [#allocation7], 4294967280 }
 0x2a1 PF: > { %s19_s14 = sadd.s32 1, %s773_s14   ;;  %s1039_s9 = smov %s757_s10 }
 0x2a2   : > { %p16_p4 = scmp.ge.s32.totalorder %s19_s14, 4   ;;  %s1040_s10 = smov %s761_s11 }
 0x2a3   : > { %s1041_s11 = smov %s848_s21  ;;  %s1042_s12 = smov %s769_s13 }
 0x2a4   : > { %s1043_s13 = smov %s1045_s16  ;;  %18 = sbr.rel (!%p16_p4) target bundleno = 7 (0x7), region = 91 }
 0x2ab   :  { %434 = vsyncpa [#allocation6], 1 }
 0x2ac   :  { %436 = vsyncpa [#allocation6 + $0x1], 1 }
 0x2ad   :  { %437 = vsyncpa [#allocation9], 1 }
 0x2ae   :  { %439 = vsyncpa [#allocation9 + $0x1], 1 }
 0x2af   :  { %440 = vsyncpa [#allocation7], 1 }
 0x2b0   :  { %442 = vsyncpa [#allocation7 + $0x1], 1 }

</bundles_post_ra>
